<compile_context>
chip_gen: v7x
topology: tpu7x:2x2x1
jax: 0.10.0
libtpu: 0.0.40
codegen_flags: <defaults>
</compile_context>

<pallas_src>
import functools

import jax
import jax.numpy as jnp
from jax.experimental import pallas as pl
from jax.experimental.pallas import tpu as pltpu


def _dense_basic_block_kernel(x_ref, scale_ref, shift_ref, w_ref, out_ref, *,
                              H, W, Cout, Cout_pad, n_blk):
    """Fused BN(inference) + ReLU + 3x3 same-conv + channel concat.

    x_ref     : (n_blk, Cin, S)          channel-major images, S = H*W
    scale_ref : (Cin, 1)                 gamma / sqrt(var + eps)
    shift_ref : (Cin, 1)                 beta - mean * scale
    w_ref     : (9*Cout_pad, Cin)        conv weight (bf16), tap-major rows,
                                         Cout zero-padded to Cout_pad per tap
    out_ref   : (n_blk, Cin+Cout, S)     [x ; conv(relu(bn(x)))]  (fused cat)
    """
    S = H * W

    scale = scale_ref[...]                                 # (Cin, 1) f32
    shift = shift_ref[...]                                 # (Cin, 1) f32
    w = w_ref[...]                                         # (9*Cpad, Cin) bf16

    # Per-image spatial index -> boundary-validity masks (hoisted, shared by
    # every image in the block).  Tap (dy, dx) at spatial index s is valid iff
    # 0 <= row+dy < H and 0 <= col+dx < W  (padding=1 -> zero otherwise).
    sp = jax.lax.broadcasted_iota(jnp.int32, (1, S), 1)
    col = sp % W
    taps = []
    for dy in (-1, 0, 1):
        for dx in (-1, 0, 1):
            conds = []
            if dy == -1:
                conds.append(sp >= W)                      # row - 1 >= 0
            elif dy == 1:
                conds.append(sp < (H - 1) * W)             # row + 1 <  H
            if dx == -1:
                conds.append(col >= 1)                     # col - 1 >= 0
            elif dx == 1:
                conds.append(col <= W - 2)                 # col + 1 <  W
            valid = None
            for c in conds:
                valid = c if valid is None else (valid & c)
            taps.append((dy * W + dx, valid))

    for b in range(n_blk):
        x_b = x_ref[b]                                     # (Cin, S)

        # --- BatchNorm (folded affine) + ReLU, f32 on the VPU ---------------
        y = jnp.maximum(x_b.astype(jnp.float32) * scale + shift, 0.0)

        # --- ONE MXU pass: (9*Cout_pad, Cin) @ (Cin, S) -> (9*Cout_pad, S) --
        z = jnp.dot(w, y.astype(w.dtype), preferred_element_type=jnp.float32)

        # --- shift-and-accumulate the 9 tap slices (XLU roll + VPU mask) ----
        acc = jnp.zeros((Cout_pad, S), jnp.float32)
        for t, (off, valid) in enumerate(taps):
            z_t = z[t * Cout_pad:(t + 1) * Cout_pad, :]    # sublane-aligned
            if off != 0:
                # rolled[o, s] = z_t[o, (s + off) mod S]; wraparound positions
                # are exactly the masked (invalid) ones.
                z_t = pltpu.roll(z_t, shift=(-off) % S, axis=1)
            if valid is not None:
                z_t = jnp.where(valid, z_t, 0.0)
            acc = acc + z_t

        # --- fused torch.cat((x, conv), channel): lane-dense full-row store -
        out_ref[b] = jnp.concatenate(
            [x_b.astype(out_ref.dtype), acc[:Cout].astype(out_ref.dtype)],
            axis=0)


def _choose_n_blk(n, per_image_bytes, budget_bytes=8 << 20):
    """Largest divisor of n under the VMEM budget, keeping grid length >= 2."""
    cap = max(1, budget_bytes // max(per_image_bytes, 1))
    if n >= 2:
        cap = min(cap, n // 2)   # grid >= 2 -> both v7x TensorCores get work
    best = 1
    for nb in range(1, int(min(cap, n)) + 1):
        if n % nb == 0:
            best = nb
    return best


def dense_basic_block(x_nchw, gamma, beta, running_mean, running_var,
                      weight_oihw, eps=1e-5):
    """NCHW in / NCHW out, matching the PyTorch module (eval mode)."""
    N, Cin, H, W = x_nchw.shape
    Cout = weight_oihw.shape[0]
    S = H * W
    Cout_pad = -(-Cout // 8) * 8          # pad per-tap output rows to 8-align

    # Fold BN running stats into per-channel scale/shift (tiny glue, plain JAX).
    scale = gamma / jnp.sqrt(running_var + eps)
    shift = beta - running_mean * scale
    scale = scale.astype(jnp.float32).reshape(Cin, 1)
    shift = shift.astype(jnp.float32).reshape(Cin, 1)

    # OIHW -> (ky, kx, Cout, Cin) -> pad Cout -> (9*Cout_pad, Cin); bf16 MXU op.
    w_taps = jnp.transpose(weight_oihw, (2, 3, 0, 1)).reshape(9, Cout, Cin)
    w_taps = jnp.pad(w_taps, ((0, 0), (0, Cout_pad - Cout), (0, 0)))
    w_stacked = w_taps.reshape(9 * Cout_pad, Cin).astype(jnp.bfloat16)

    x_flat = x_nchw.reshape(N, Cin, S)    # free reshape, stays channel-major

    # Batch blocking: amortize per-step overhead / widen DMAs, VMEM-budgeted.
    itemsize = jnp.dtype(x_nchw.dtype).itemsize
    per_image_bytes = (2 * (2 * Cin + Cout) * itemsize        # dbl-buf in+out
                       + (Cin + 11 * Cout_pad) * 4) * S       # y, z, acc (f32)
    n_blk = _choose_n_blk(N, per_image_bytes)
    grid = (N // n_blk,)

    kernel = functools.partial(_dense_basic_block_kernel, H=H, W=W, Cout=Cout,
                               Cout_pad=Cout_pad, n_blk=n_blk)
    out_flat = pl.pallas_call(
        kernel,
        out_shape=jax.ShapeDtypeStruct((N, Cin + Cout, S), x_nchw.dtype),
        grid=grid,
        in_specs=[
            pl.BlockSpec((n_blk, Cin, S), lambda i: (i, 0, 0)),     # x block
            pl.BlockSpec((Cin, 1), lambda i: (0, 0)),               # scale
            pl.BlockSpec((Cin, 1), lambda i: (0, 0)),               # shift
            pl.BlockSpec((9 * Cout_pad, Cin), lambda i: (0, 0)),    # weight
        ],
        out_specs=pl.BlockSpec((n_blk, Cin + Cout, S), lambda i: (i, 0, 0)),
        compiler_params=pltpu.CompilerParams(
            dimension_semantics=("parallel",),
            vmem_limit_bytes=48 * 1024 * 1024),   # safe under v7x 64 MiB VMEM
    )(x_flat, scale, shift, w_stacked)

    return out_flat.reshape(N, Cin + Cout, H, W)


def reference(x_nchw, gamma, beta, running_mean, running_var, weight_oihw,
              eps=1e-5):
    """Pure-JAX reference of the PyTorch forward (eval mode), f32 throughout."""
    xn = (x_nchw - running_mean[None, :, None, None]) / jnp.sqrt(
        running_var[None, :, None, None] + eps)
    xn = xn * gamma[None, :, None, None] + beta[None, :, None, None]
    y = jnp.maximum(xn, 0.0)
    conv = jax.lax.conv_general_dilated(
        y, weight_oihw, window_strides=(1, 1), padding="SAME",
        dimension_numbers=("NCHW", "OIHW", "NCHW"))
    return jnp.concatenate([x_nchw, conv], axis=1)


if __name__ == "__main__":
    # DenseNet-40-ish tiny config: inplanes=4, growth (outplanes)=12, 16x16 maps.
    N, Cin, H, W = 2, 4, 16, 16
    Cout = 12

    key = jax.random.PRNGKey(0)
    kx, kg, kb, km, kv, kw = jax.random.split(key, 6)

    x = jax.random.normal(kx, (N, Cin, H, W), dtype=jnp.float32)
    gamma = 1.0 + 0.1 * jax.random.normal(kg, (Cin,), dtype=jnp.float32)
    beta = 0.1 * jax.random.normal(kb, (Cin,), dtype=jnp.float32)
    running_mean = 0.1 * jax.random.normal(km, (Cin,), dtype=jnp.float32)
    running_var = jnp.abs(jax.random.normal(kv, (Cin,), dtype=jnp.float32)) + 0.5
    weight = 0.1 * jax.random.normal(kw, (Cout, Cin, 3, 3), dtype=jnp.float32)

    out = dense_basic_block(x, gamma, beta, running_mean, running_var, weight)
    out = jax.block_until_ready(out)

    ref = reference(x, gamma, beta, running_mean, running_var, weight)
    assert out.shape == (N, Cin + Cout, H, W), out.shape
    # bf16 MXU operands (f32 accumulation) -> tolerance relaxed vs f32 reference.
    assert jnp.allclose(out, ref, atol=3e-2, rtol=3e-2), float(
        jnp.max(jnp.abs(out - ref)))
    # passthrough channels (torch.cat's x part) must be bit-exact
    assert jnp.array_equal(out[:, :Cin], x)

    print("KERNEL_OK")
</pallas_src>

<mosaic_0001>
module attributes {stable_mosaic.version = 11 : i64} {
  func.func @_dense_basic_block_kernel(%arg0: i32, %arg1: memref<1x4x256xf32, #tpu.memory_space<vmem>>, %arg2: memref<4x1xf32, #tpu.memory_space<vmem>>, %arg3: memref<4x1xf32, #tpu.memory_space<vmem>>, %arg4: memref<144x4xbf16, #tpu.memory_space<vmem>>, %arg5: memref<1x16x256xf32, #tpu.memory_space<vmem>>) attributes {dimension_semantics = [#tpu.dimension_semantics<parallel>], iteration_bounds = array<i64: 2>, scalar_prefetch = 0 : i64, scratch_operands = 0 : i64, tpu.core_type = #tpu.core_type<tc>, window_params = [{transform_indices = @transform_0, window_bounds = array<i64: 1, 4, 256>}, {pipeline_mode = #tpu.pipeline_mode<synchronous>, transform_indices = @transform_1, window_bounds = array<i64: 4, 1>}, {pipeline_mode = #tpu.pipeline_mode<synchronous>, transform_indices = @transform_2, window_bounds = array<i64: 4, 1>}, {pipeline_mode = #tpu.pipeline_mode<synchronous>, transform_indices = @transform_3, window_bounds = array<i64: 144, 4>}, {transform_indices = @transform_4, window_bounds = array<i64: 1, 16, 256>}]} {
    %c0 = arith.constant 0 : index
    %c0_0 = arith.constant 0 : index
    %0 = vector.load %arg2[%c0, %c0_0] : memref<4x1xf32, #tpu.memory_space<vmem>>, vector<4x1xf32>
    %c0_1 = arith.constant 0 : index
    %c0_2 = arith.constant 0 : index
    %1 = vector.load %arg3[%c0_1, %c0_2] : memref<4x1xf32, #tpu.memory_space<vmem>>, vector<4x1xf32>
    %c0_3 = arith.constant 0 : index
    %c0_4 = arith.constant 0 : index
    %2 = vector.load %arg4[%c0_3, %c0_4] : memref<144x4xbf16, #tpu.memory_space<vmem>>, vector<144x4xbf16>
    %3 = tpu.iota {dimensions = array<i32: 1>} : vector<1x256xi32>
    %c16_i32 = arith.constant 16 : i32
    %c0_i32 = arith.constant 0 : i32
    %4 = arith.cmpi eq, %c16_i32, %c0_i32 : i32
    %c1_i32 = arith.constant 1 : i32
    %5 = arith.select %4, %c1_i32, %c16_i32 : i32
    %6 = vector.broadcast %5 : i32 to vector<1x256xi32>
    %7 = arith.remsi %3, %6 : vector<1x256xi32>
    %c0_i32_5 = arith.constant 0 : i32
    %8 = vector.broadcast %c0_i32_5 : i32 to vector<1x256xi32>
    %9 = arith.cmpi ne, %7, %8 : vector<1x256xi32>
    %c0_i32_6 = arith.constant 0 : i32
    %10 = vector.broadcast %c0_i32_6 : i32 to vector<1x256xi32>
    %11 = arith.cmpi slt, %7, %10 : vector<1x256xi32>
    %c0_i32_7 = arith.constant 0 : i32
    %12 = arith.cmpi slt, %5, %c0_i32_7 : i32
    %13 = vector.broadcast %12 : i1 to vector<1x256xi1>
    %14 = vector.broadcast %13 : vector<1x256xi1> to vector<1x256xi1>
    %15 = arith.xori %11, %14 : vector<1x256xi1>
    %16 = arith.andi %15, %9 : vector<1x256xi1>
    %17 = vector.broadcast %5 : i32 to vector<1x256xi32>
    %18 = arith.addi %7, %17 : vector<1x256xi32>
    %19 = arith.select %16, %18, %7 : vector<1x256xi1>, vector<1x256xi32>
    %c16_i32_8 = arith.constant 16 : i32
    %20 = vector.broadcast %c16_i32_8 : i32 to vector<1x256xi32>
    %21 = arith.cmpi sge, %3, %20 : vector<1x256xi32>
    %c1_i32_9 = arith.constant 1 : i32
    %22 = vector.broadcast %c1_i32_9 : i32 to vector<1x256xi32>
    %23 = arith.cmpi sge, %19, %22 : vector<1x256xi32>
    %24 = arith.andi %21, %23 : vector<1x256xi1>
    %c16_i32_10 = arith.constant 16 : i32
    %25 = vector.broadcast %c16_i32_10 : i32 to vector<1x256xi32>
    %26 = arith.cmpi sge, %3, %25 : vector<1x256xi32>
    %c16_i32_11 = arith.constant 16 : i32
    %27 = vector.broadcast %c16_i32_11 : i32 to vector<1x256xi32>
    %28 = arith.cmpi sge, %3, %27 : vector<1x256xi32>
    %c14_i32 = arith.constant 14 : i32
    %29 = vector.broadcast %c14_i32 : i32 to vector<1x256xi32>
    %30 = arith.cmpi sle, %19, %29 : vector<1x256xi32>
    %31 = arith.andi %28, %30 : vector<1x256xi1>
    %c1_i32_12 = arith.constant 1 : i32
    %32 = vector.broadcast %c1_i32_12 : i32 to vector<1x256xi32>
    %33 = arith.cmpi sge, %19, %32 : vector<1x256xi32>
    %c14_i32_13 = arith.constant 14 : i32
    %34 = vector.broadcast %c14_i32_13 : i32 to vector<1x256xi32>
    %35 = arith.cmpi sle, %19, %34 : vector<1x256xi32>
    %c240_i32 = arith.constant 240 : i32
    %36 = vector.broadcast %c240_i32 : i32 to vector<1x256xi32>
    %37 = arith.cmpi slt, %3, %36 : vector<1x256xi32>
    %c1_i32_14 = arith.constant 1 : i32
    %38 = vector.broadcast %c1_i32_14 : i32 to vector<1x256xi32>
    %39 = arith.cmpi sge, %19, %38 : vector<1x256xi32>
    %40 = arith.andi %37, %39 : vector<1x256xi1>
    %c240_i32_15 = arith.constant 240 : i32
    %41 = vector.broadcast %c240_i32_15 : i32 to vector<1x256xi32>
    %42 = arith.cmpi slt, %3, %41 : vector<1x256xi32>
    %c240_i32_16 = arith.constant 240 : i32
    %43 = vector.broadcast %c240_i32_16 : i32 to vector<1x256xi32>
    %44 = arith.cmpi slt, %3, %43 : vector<1x256xi32>
    %c14_i32_17 = arith.constant 14 : i32
    %45 = vector.broadcast %c14_i32_17 : i32 to vector<1x256xi32>
    %46 = arith.cmpi sle, %19, %45 : vector<1x256xi32>
    %47 = arith.andi %44, %46 : vector<1x256xi1>
    %c0_18 = arith.constant 0 : index
    %c0_19 = arith.constant 0 : index
    %c0_20 = arith.constant 0 : index
    %48 = vector.load %arg1[%c0_18, %c0_19, %c0_20] : memref<1x4x256xf32, #tpu.memory_space<vmem>>, vector<1x4x256xf32>
    %49 = vector.shape_cast %48 : vector<1x4x256xf32> to vector<4x256xf32>
    %50 = vector.broadcast %0 : vector<4x1xf32> to vector<4x256xf32>
    %51 = arith.mulf %49, %50 : vector<4x256xf32>
    %52 = vector.broadcast %1 : vector<4x1xf32> to vector<4x256xf32>
    %53 = arith.addf %51, %52 : vector<4x256xf32>
    %cst = arith.constant 0.000000e+00 : f32
    %54 = vector.broadcast %cst : f32 to vector<4x256xf32>
    %55 = arith.maximumf %53, %54 : vector<4x256xf32>
    %56 = arith.truncf %55 : vector<4x256xf32> to vector<4x256xbf16>
    %cst_21 = arith.constant dense<0.000000e+00> : vector<144x256xf32>
    %57 = tpu.matmul %2, %56, %cst_21 {dimension_numbers = #tpu.dot_dimension_numbers<[1], [0], [0], [1], [0, 0, 1, 1], [], []>} : vector<144x4xbf16>, vector<4x256xbf16>, vector<144x256xf32> -> vector<144x256xf32>
    %cst_22 = arith.constant 0.000000e+00 : f32
    %58 = vector.broadcast %cst_22 : f32 to vector<16x256xf32>
    %59 = vector.extract_strided_slice %57 {offsets = [0, 0], sizes = [16, 256], strides = [1, 1]} : vector<144x256xf32> to vector<16x256xf32>
    %c17_i32 = arith.constant 17 : i32
    %60 = tpu.dynamic_rotate %59 by %c17_i32 dim 1 : vector<16x256xf32>, i32 -> vector<16x256xf32>
    %cst_23 = arith.constant 0.000000e+00 : f32
    %61 = vector.shape_cast %24 : vector<1x256xi1> to vector<1x256xi1>
    %62 = vector.broadcast %61 : vector<1x256xi1> to vector<16x256xi1>
    %63 = vector.broadcast %cst_23 : f32 to vector<16x256xf32>
    %64 = arith.select %62, %60, %63 : vector<16x256xi1>, vector<16x256xf32>
    %65 = arith.addf %58, %64 : vector<16x256xf32>
    %66 = vector.extract_strided_slice %57 {offsets = [16, 0], sizes = [16, 256], strides = [1, 1]} : vector<144x256xf32> to vector<16x256xf32>
    %c16_i32_24 = arith.constant 16 : i32
    %67 = tpu.dynamic_rotate %66 by %c16_i32_24 dim 1 : vector<16x256xf32>, i32 -> vector<16x256xf32>
    %cst_25 = arith.constant 0.000000e+00 : f32
    %68 = vector.shape_cast %26 : vector<1x256xi1> to vector<1x256xi1>
    %69 = vector.broadcast %68 : vector<1x256xi1> to vector<16x256xi1>
    %70 = vector.broadcast %cst_25 : f32 to vector<16x256xf32>
    %71 = arith.select %69, %67, %70 : vector<16x256xi1>, vector<16x256xf32>
    %72 = arith.addf %65, %71 : vector<16x256xf32>
    %73 = vector.extract_strided_slice %57 {offsets = [32, 0], sizes = [16, 256], strides = [1, 1]} : vector<144x256xf32> to vector<16x256xf32>
    %c15_i32 = arith.constant 15 : i32
    %74 = tpu.dynamic_rotate %73 by %c15_i32 dim 1 : vector<16x256xf32>, i32 -> vector<16x256xf32>
    %cst_26 = arith.constant 0.000000e+00 : f32
    %75 = vector.shape_cast %31 : vector<1x256xi1> to vector<1x256xi1>
    %76 = vector.broadcast %75 : vector<1x256xi1> to vector<16x256xi1>
    %77 = vector.broadcast %cst_26 : f32 to vector<16x256xf32>
    %78 = arith.select %76, %74, %77 : vector<16x256xi1>, vector<16x256xf32>
    %79 = arith.addf %72, %78 : vector<16x256xf32>
    %80 = vector.extract_strided_slice %57 {offsets = [48, 0], sizes = [16, 256], strides = [1, 1]} : vector<144x256xf32> to vector<16x256xf32>
    %c1_i32_27 = arith.constant 1 : i32
    %81 = tpu.dynamic_rotate %80 by %c1_i32_27 dim 1 : vector<16x256xf32>, i32 -> vector<16x256xf32>
    %cst_28 = arith.constant 0.000000e+00 : f32
    %82 = vector.shape_cast %33 : vector<1x256xi1> to vector<1x256xi1>
    %83 = vector.broadcast %82 : vector<1x256xi1> to vector<16x256xi1>
    %84 = vector.broadcast %cst_28 : f32 to vector<16x256xf32>
    %85 = arith.select %83, %81, %84 : vector<16x256xi1>, vector<16x256xf32>
    %86 = arith.addf %79, %85 : vector<16x256xf32>
    %87 = vector.extract_strided_slice %57 {offsets = [64, 0], sizes = [16, 256], strides = [1, 1]} : vector<144x256xf32> to vector<16x256xf32>
    %88 = arith.addf %86, %87 : vector<16x256xf32>
    %89 = vector.extract_strided_slice %57 {offsets = [80, 0], sizes = [16, 256], strides = [1, 1]} : vector<144x256xf32> to vector<16x256xf32>
    %c255_i32 = arith.constant 255 : i32
    %90 = tpu.dynamic_rotate %89 by %c255_i32 dim 1 : vector<16x256xf32>, i32 -> vector<16x256xf32>
    %cst_29 = arith.constant 0.000000e+00 : f32
    %91 = vector.shape_cast %35 : vector<1x256xi1> to vector<1x256xi1>
    %92 = vector.broadcast %91 : vector<1x256xi1> to vector<16x256xi1>
    %93 = vector.broadcast %cst_29 : f32 to vector<16x256xf32>
    %94 = arith.select %92, %90, %93 : vector<16x256xi1>, vector<16x256xf32>
    %95 = arith.addf %88, %94 : vector<16x256xf32>
    %96 = vector.extract_strided_slice %57 {offsets = [96, 0], sizes = [16, 256], strides = [1, 1]} : vector<144x256xf32> to vector<16x256xf32>
    %c241_i32 = arith.constant 241 : i32
    %97 = tpu.dynamic_rotate %96 by %c241_i32 dim 1 : vector<16x256xf32>, i32 -> vector<16x256xf32>
    %cst_30 = arith.constant 0.000000e+00 : f32
    %98 = vector.shape_cast %40 : vector<1x256xi1> to vector<1x256xi1>
    %99 = vector.broadcast %98 : vector<1x256xi1> to vector<16x256xi1>
    %100 = vector.broadcast %cst_30 : f32 to vector<16x256xf32>
    %101 = arith.select %99, %97, %100 : vector<16x256xi1>, vector<16x256xf32>
    %102 = arith.addf %95, %101 : vector<16x256xf32>
    %103 = vector.extract_strided_slice %57 {offsets = [112, 0], sizes = [16, 256], strides = [1, 1]} : vector<144x256xf32> to vector<16x256xf32>
    %c240_i32_31 = arith.constant 240 : i32
    %104 = tpu.dynamic_rotate %103 by %c240_i32_31 dim 1 : vector<16x256xf32>, i32 -> vector<16x256xf32>
    %cst_32 = arith.constant 0.000000e+00 : f32
    %105 = vector.shape_cast %42 : vector<1x256xi1> to vector<1x256xi1>
    %106 = vector.broadcast %105 : vector<1x256xi1> to vector<16x256xi1>
    %107 = vector.broadcast %cst_32 : f32 to vector<16x256xf32>
    %108 = arith.select %106, %104, %107 : vector<16x256xi1>, vector<16x256xf32>
    %109 = arith.addf %102, %108 : vector<16x256xf32>
    %110 = vector.extract_strided_slice %57 {offsets = [128, 0], sizes = [16, 256], strides = [1, 1]} : vector<144x256xf32> to vector<16x256xf32>
    %c239_i32 = arith.constant 239 : i32
    %111 = tpu.dynamic_rotate %110 by %c239_i32 dim 1 : vector<16x256xf32>, i32 -> vector<16x256xf32>
    %cst_33 = arith.constant 0.000000e+00 : f32
    %112 = vector.shape_cast %47 : vector<1x256xi1> to vector<1x256xi1>
    %113 = vector.broadcast %112 : vector<1x256xi1> to vector<16x256xi1>
    %114 = vector.broadcast %cst_33 : f32 to vector<16x256xf32>
    %115 = arith.select %113, %111, %114 : vector<16x256xi1>, vector<16x256xf32>
    %116 = arith.addf %109, %115 : vector<16x256xf32>
    %117 = vector.extract_strided_slice %116 {offsets = [0, 0], sizes = [12, 256], strides = [1, 1]} : vector<16x256xf32> to vector<12x256xf32>
    %118 = tpu.concatenate %49, %117 in 0 : vector<4x256xf32>, vector<12x256xf32> -> vector<16x256xf32>
    %c0_34 = arith.constant 0 : index
    %c0_35 = arith.constant 0 : index
    %c0_36 = arith.constant 0 : index
    %119 = vector.load %arg5[%c0_34, %c0_35, %c0_36] : memref<1x16x256xf32, #tpu.memory_space<vmem>>, vector<1x16x256xf32>
    %120 = vector.shape_cast %119 : vector<1x16x256xf32> to vector<16x256xf32>
    %121 = vector.shape_cast %118 : vector<16x256xf32> to vector<1x16x256xf32>
    tpu.vector_store %arg5[%c0_34, %c0_35, %c0_36], %121 {strides = array<i32>} : memref<1x16x256xf32, #tpu.memory_space<vmem>>, vector<1x16x256xf32>,
    return
  }
  func.func @transform_0(%arg0: i32) -> (i32, i32, i32) {
    %c0_i32 = arith.constant 0 : i32
    %c0_i32_0 = arith.constant 0 : i32
    %c0_i32_1 = arith.constant 0 : i32
    return %arg0, %c0_i32, %c0_i32_0 : i32, i32, i32
  }
  func.func @transform_1(%arg0: i32) -> (i32, i32) {
    %c0_i32 = arith.constant 0 : i32
    %c0_i32_0 = arith.constant 0 : i32
    %c0_i32_1 = arith.constant 0 : i32
    return %c0_i32, %c0_i32_0 : i32, i32
  }
  func.func @transform_2(%arg0: i32) -> (i32, i32) {
    %c0_i32 = arith.constant 0 : i32
    %c0_i32_0 = arith.constant 0 : i32
    %c0_i32_1 = arith.constant 0 : i32
    return %c0_i32, %c0_i32_0 : i32, i32
  }
  func.func @transform_3(%arg0: i32) -> (i32, i32) {
    %c0_i32 = arith.constant 0 : i32
    %c0_i32_0 = arith.constant 0 : i32
    %c0_i32_1 = arith.constant 0 : i32
    return %c0_i32, %c0_i32_0 : i32, i32
  }
  func.func @transform_4(%arg0: i32) -> (i32, i32, i32) {
    %c0_i32 = arith.constant 0 : i32
    %c0_i32_0 = arith.constant 0 : i32
    %c0_i32_1 = arith.constant 0 : i32
    return %arg0, %c0_i32, %c0_i32_0 : i32, i32, i32
  }
}

</mosaic_0001>

<bundles_post_ra>
// kernel: tpu_custom_call.1
= control target key start
LH: loop header
LB: loop body
LE: loop exit
PB: predicated region body
PF: predicated region fallthrough
CT: control target
= control target key end

     0   :  { %9 = vsyncpa [#allocation3], 0  ;;  %s1392_s0 = inlined_call_operand.vmem [shape: f32[2,4,256], index: 0, kind: input, shape index: {}]   ;;  %s1393_s1 = inlined_call_operand.vmem [shape: f32[4,1], index: 1, kind: input, shape index: {}]   ;;  %s1394_s2 = inlined_call_operand.vmem [shape: f32[4,1], index: 2, kind: input, shape index: {}]   ;;  %s1395_s3 = inlined_call_operand.vmem [shape: bf16[144,4], index: 3, kind: input, shape index: {}]   ;;  %s1396_s4 = inlined_call_operand.hbm [shape: f32[2,16,256], index: 4, kind: output, shape index: {}]  }
   0x1   :  { %11 = vsyncpa [#allocation3 + $0x1], 0  ;;  %s997_s15 = smov 0   ;;  %s999_s16 = smov 0  }
   0x2   :  { %s1001_s17 = smov 0   ;;  %s1003_s18 = smov 0  }
   0x3 LB: > { %s1018_s19 = sadd.s32 4294967295, %s958_s18   ;;  %s800_s20 = sadd.s32 4294967294, %s958_s18   ;;  %s958_s18 = sphi %s1003_s18, %s1418_s18   ;;  %s954_s17 = sphi %s1001_s17, %s1417_s17   ;;  %s950_s16 = sphi %s999_s16, %s1416_s16   ;;  %s946_s15 = sphi %s997_s15, %s1415_s15  }
   0x4   : > { %s1022_s21 = sadd.s32 1, %s958_s18   ;;  %s113_s22 = sadd.s32 1, %s954_s17 }
   0x5   : > { %s110_s23 = ssub.s32 %s958_s18, %s1022_s21  ;;  %p123_p0 = scmp.ne.s32.totalorder %s954_s17, %s950_s16 }
   0x6   : > { %p111_p1 = scmp.eq.s32.totalorder %s110_s23, 0  ;;  %p124_p2 = scmp.eq.s32.totalorder %s1018_s19, 1 }
   0x7   : > { %p129_p3 = scmp.ne.s32.totalorder %s950_s16, %s946_s15  ;;  %p130_p4 = scmp.eq.s32.totalorder %s800_s20, 1 }
   0x8   : > { %s1033_s24 = scalar_select %p111_p1, %s954_s17, %s113_s22  }
   0x9   : > { %p1035_p5 = por %p124_p2, %p123_p0  ;;  %p1039_p6 = por %p130_p4, %p129_p3 }
   0xa   : > { %p803_p7 = scmp.ge.s32.totalorder %s958_s18, 1  ;;  %p165_p8 = scmp.lt.s32.totalorder %s958_s18, 3 }
   0xc   : > { %p166_p9 = pnand %p803_p7, %p165_p8 }
   0xd   : > { %v197_v0 = vld [vmem:[%s1393_s1] sm:$0xf] (!%p166_p9)  ;;  %v960_v1 = vmov (!%p166_p9), 0   ;;  %p191_p10 = scmp.lt.s32.totalorder (!%p166_p9), %s1018_s19, 1  ;;  %v217_v3 = vlaneseq (!%p166_p9)  ;;  %v961_v4 = vmov (!%p166_p9), 839922192  }
   0xe   : > { %169 = sbr.rel (%p166_p9) target bundleno = 574 (0x23e), region = 36  ;;  %885 = vset.pattern.permute.xlu0 (!%p166_p9), %v960_v1  ;;  %405 = vmatprep.mubr.bf16.mxu0 (!%p166_p9), %v960_v1  ;;  %v198_v2 = vld [vmem:[%s1394_s2] sm:$0xf] (!%p166_p9)  ;;  %v266_v5 = vunpack.c.l.s4 (!%p166_p9), %v961_v4  ;;  %vm366_vm0 = vcmask (!%p166_p9), 1041408   ;;  %v888_v22 = vld [vmem:[%s1395_s3 + $0x28] sm:$0xff] (!%p166_p9)   ;;  %vm338_vm1 = vcmask (!%p166_p9), 31744  }
   0xf   : > { %263 = vperm.xlu0 (!%p166_p9), %885, %v197_v0   ;;  %455 = vmatprep.mubr.bf16.mxu1 (!%p166_p9), %v960_v1  ;;  %v269_v7 = vshrl.u32 (!%p166_p9), %v217_v3, 7  ;;  %v887_v21 = vld [vmem:[%s1395_s3] sm:$0xff] (!%p166_p9)   ;;  %v889_v23 = vld [vmem:[%s1395_s3 + $0x8] sm:$0xff] (!%p166_p9)   ;;  %v890_v24 = vld [vmem:[%s1395_s3 + $0x30] sm:$0xff] (!%p166_p9)   ;;  %s962_s11 = smov (!%p166_p9), 127   ;;  %s963_s12 = smov (!%p166_p9), 17  }
  0x10   : > { %v267_v6 = vunpack.c.0.s8 (!%p166_p9), %v266_v5  ;;  %v891_v25 = vld [vmem:[%s1395_s3 + $0x10] sm:$0xff] (!%p166_p9)   ;;  %v892_v26 = vld [vmem:[%s1395_s3 + $0x38] sm:$0xff] (!%p166_p9)   ;;  %v894_v28 = vld [vmem:[%s1395_s3 + $0x40] sm:$0xff] (!%p166_p9)   ;;  %s964_s13 = smov (!%p166_p9), 16   ;;  %s965_s14 = smov (!%p166_p9), 113  }
  0x11   : > { %v893_v27 = vld [vmem:[%s1395_s3 + $0x18] sm:$0xff] (!%p166_p9)   ;;  %v895_v29 = vld [vmem:[%s1395_s3 + $0x20] sm:$0xff] (!%p166_p9)   ;;  %s966_s20 = smov (!%p166_p9), 15   ;;  %s967_s22 = smov (!%p166_p9), 112  }
  0x12   : > { %v270_v8 = vsub.s32 (!%p166_p9), %v267_v6, %v269_v7  ;;  %s968_s23 = smov (!%p166_p9), 1   ;;  %s969_s27 = smov (!%p166_p9), 111  }
  0x13   : > { %276 = vperm.xlu0 (!%p166_p9), %885, %v198_v2   ;;  %s188_s28 = sand.u32 (!%p166_p9), 1, %s950_s16  }
  0x14   : > { %s804_s29 = sshll.u32 (!%p166_p9), %s188_s28, 5 }
  0x15   : > { %s192_s5 = scalar_select %p191_p10, %s1018_s19, 1 }
  0x16   : > { %s190_s30 = scalar_lea.vmem [#allocation2], %s804_s29 }
  0x17   : > { %s831_s6 = sshll.u32 %s192_s5, 3  ;;  %s832_s5 = sshll.u32 %s1018_s19, 9 }
  0x18   : > { %s195_s9 = scalar_lea.vmem %s1392_s0, %s831_s6  ;;  %s738_s6 = sshll.u32 %s190_s30, 4  ;;  %s1344_s6 = int_to_ptr.vmem [resolvable:$true] %s738_s6 }
  0x19   : > { %v1057_v11 = vld [vmem:[%s195_s9] sm:$0xff]  ;;  %s1342_s9 = scalar_lea.hbm %s1396_s4, %s832_s5  ;;  %s1350_s19 = scalar_lea.sflag [#allocation3], %s188_s28 }
  0x1a   : > { %s896_s10 = scalar_lea.vmem %s1344_s6, 512 }
  0x1b   : > { %p897_p11 = scmp.ne.s32.totalorder %s1344_s6, %s896_s10 }
  0x1d   : > { %p898_p12 = pnand %p897_p11, %p1035_p5 }
  0x1f   : > { %p899_p13 = pneg %p898_p12 }
  0x8e   : > { %v264_v9 = vpop.permute.xlu0 %263 }
  0x8f   : > { %v271_v10 = vrot.slane %v264_v9, %v270_v8 }
  0x91   : > { %v273_v13 = vmul.f32 %v271_v10, %v1057_v11 }
  0x92   : > { %v277_v12 = vpop.permute.xlu0 %276 }
  0x93   : > { %v284_v14 = vrot.slane %v277_v12, %v270_v8 }
  0x95   : > { %v286_v15 = vadd.f32 %v284_v14, %v273_v13 }
  0x97   : > { %v287_v16 = vmax.f32 %v286_v15, 0.0 }
  0x99   : > { %v289_v17 = vcombine.high %v287_v16, %v287_v16  ;;  %v291_v18 = vpack.c.bf16 %v287_v16, %v287_v16 }
  0x9b   : > { %v292_v19 = vpack.c.bf16 %v289_v17, %v289_v17  ;;  %v368_v20 = vsel %vm366_vm0, %v291_v18, 0  ;;  %v1119_v18 = vand.u32 127, %v217_v3 }
  0x9d   : > { %816 = vmatprep.subr.msk.bf16.mxu0 %vm366_vm0, %v292_v19  ;;  %833 = vmatprep.subr.msk.bf16.mxu1 %vm366_vm0, %v292_v19  ;;  %vm529_vm2 = vcmp.lt.s32.totalorder %v1119_v18, 16  ;;  %vm244_vm3 = vcmp.ge.s32.totalorder %v1119_v18, 16  ;;  %vm504_vm5 = vcmp.lt.s32.totalorder %v1119_v18, 17  ;;  %vm554_vm6 = vcmp.lt.s32.totalorder %v1119_v18, 15 }
  0x9e   : > { %374 = vmatpush1.bf16.msra.mxu0 %v368_v20  ;;  %834 = vmatpush1.bf16.msra.mxu1 %v368_v20  ;;  %vm608_vm10 = vcmp.lt.s32.totalorder %v1119_v18, 127  ;;  %vm633_vm14 = vcmp.lt.s32.totalorder %v1119_v18, 113  ;;  %vm579_vm15 = vcmp.lt.s32.totalorder %v1119_v18, 1  ;;  %vm658_vm0 = vcmp.lt.s32.totalorder %v1119_v18, 112 }
  0xa1   : > { %817 = vmatmul.mubr.msk.bf16.vlgmr.msra.gmra.mrb[0].mxu0 %vm338_vm1, %v887_v21  ;;  %822 = vmatmul.mubr.msk.bf16.vlgmr.msra.gmra.mrb[0].mxu1 %vm338_vm1, %v888_v22  ;;  %v1122_v21 = vadd.s32 128, %v1119_v18  ;;  %v224_v22 = vand.u32 15, %v1119_v18 }
  0xa2   : > { %415 = vmatprep.mubr.bf16.mxu0 %v960_v1  ;;  %465 = vmatprep.mubr.bf16.mxu1 %v960_v1 }
  0xa3   : > { %vm1132_vm4 = vcmp.ge.s32.totalorder %v224_v22, 1  ;;  %vm1152_vm9 = vcmp.le.s32.totalorder %v224_v22, 14  ;;  %vm255_vm13 = vcmp.lt.s32.totalorder %v1122_v21, 240 }
  0xa4   : > { %vm1148_vm8 = vmand %vm244_vm3, %vm1132_vm4 }
  0xa5   : > { %vm1165_vm11 = vmand %vm244_vm3, %vm1152_vm9 }
  0xa9   : > { %818 = vmatmul.mubr.msk.bf16.gmra.mrb[4].mxu0 %vm338_vm1, %v889_v23  ;;  %823 = vmatmul.mubr.msk.bf16.gmra.mrb[4].mxu1 %vm338_vm1, %v890_v24 }
  0xaa   : > { %425 = vmatprep.mubr.bf16.mxu0 %v960_v1  ;;  %475 = vmatprep.mubr.bf16.mxu1 %v960_v1 }
  0xb1   : > { %819 = vmatmul.mubr.msk.bf16.gmra.mrb[8].mxu0 %vm338_vm1, %v891_v25  ;;  %824 = vmatmul.mubr.msk.bf16.gmra.mrb[8].mxu1 %vm338_vm1, %v892_v26  ;;  %v231_v25 = vand.u32 15, %v1122_v21 }
  0xb2   : > { %435 = vmatprep.mubr.bf16.mxu0 %v960_v1  ;;  %485 = vmatprep.mubr.bf16.mxu1 %v960_v1 }
  0xb3   : > { %vm1140_vm7 = vcmp.ge.s32.totalorder %v231_v25, 1  ;;  %vm1173_vm12 = vcmp.le.s32.totalorder %v231_v25, 14 }
  0xb9   : > { %820 = vmatmul.mubr.msk.bf16.gmra.mrb[12].mxu0 %vm338_vm1, %v893_v27  ;;  %825 = vmatmul.mubr.msk.bf16.gmra.mrb[12].mxu1 %vm338_vm1, %v894_v28 }
  0xba   : > { %445 = vmatprep.mubr.bf16.mxu0 %v960_v1 }
  0xc1   : > { %821 = vmatmul.mubr.msk.bf16.gmra.mrb[16].mxu0 %vm338_vm1, %v895_v29  ;;  %vm683_vm1 = vcmp.lt.s32.totalorder %v1119_v18, 111 }
 0x174   : > { %v407_v30 = vpop.f32.mrb[0].mxu0  ;;  %v457_v31 = vpop.f32.mrb[0].mxu1 }
 0x175   : > { %600 = vrot.lane.b32.xlu0 %v457_v31, %s962_s11  ;;  %496 = vrot.lane.b32.xlu1 %v407_v30, %s963_s12  ;;  %v409_v32 = vpop.f32.mrb[1].mxu0  ;;  %v459_v33 = vpop.f32.mrb[1].mxu1 }
 0x176   : > { %v411_v34 = vpop.f32.mrb[2].mxu0  ;;  %v461_v35 = vpop.f32.mrb[2].mxu1 }
 0x177   : > { %v413_v36 = vpop.f32.mrb[3].mxu0  ;;  %v463_v37 = vpop.f32.mrb[3].mxu1 }
 0x179   : > { %500 = vrot.lane.b32.xlu0 %v409_v32, %s963_s12  ;;  %498 = vrot.lane.b32.xlu1 %v411_v34, %s963_s12 }
 0x17c   : > { %v417_v38 = vpop.f32.mrb[4].mxu0  ;;  %v467_v39 = vpop.f32.mrb[4].mxu1 }
 0x17d   : > { %604 = vrot.lane.b32.xlu0 %v459_v33, %s962_s11  ;;  %602 = vrot.lane.b32.xlu1 %v461_v35, %s962_s11  ;;  %v419_v40 = vpop.f32.mrb[5].mxu0  ;;  %v469_v41 = vpop.f32.mrb[5].mxu1 }
 0x17e   : > { %v421_v42 = vpop.f32.mrb[6].mxu0  ;;  %v471_v43 = vpop.f32.mrb[6].mxu1 }
 0x17f   : > { %v423_v44 = vpop.f32.mrb[7].mxu0  ;;  %v473_v45 = vpop.f32.mrb[7].mxu1 }
 0x181   : > { %502 = vrot.lane.b32.xlu1 %v413_v36, %s963_s12  ;;  %521 = vrot.lane.b32.xlu0 %v417_v38, %s964_s13 }
 0x184   : > { %v427_v46 = vpop.f32.mrb[8].mxu0  ;;  %v477_v47 = vpop.f32.mrb[8].mxu1 }
 0x185   : > { %606 = vrot.lane.b32.xlu1 %v463_v37, %s962_s11  ;;  %625 = vrot.lane.b32.xlu0 %v467_v39, %s965_s14  ;;  %v429_v48 = vpop.f32.mrb[9].mxu0  ;;  %v479_v49 = vpop.f32.mrb[9].mxu1  ;;  %s970_s11 = smov [#allocation2]  }
 0x186   : > { %v431_v50 = vpop.f32.mrb[10].mxu0  ;;  %v481_v51 = vpop.f32.mrb[10].mxu1  ;;  %s900_s12 = sshll.u32 %s970_s11, 4  ;;  %s901_s12 = int_to_ptr.vmem [resolvable:$false] %s900_s12 }
 0x187   : > { %v433_v52 = vpop.f32.mrb[11].mxu0  ;;  %v483_v53 = vpop.f32.mrb[11].mxu1  ;;  %p903_p0 = scmp.lt.s32.totalorder %s1344_s6, %s901_s12 }
 0x189   : > { %525 = vrot.lane.b32.xlu0 %v419_v40, %s964_s13  ;;  %523 = vrot.lane.b32.xlu1 %v421_v42, %s964_s13 }
 0x18c   : > { %v437_v54 = vpop.f32.mrb[12].mxu0  ;;  %v487_v55 = vpop.f32.mrb[12].mxu1 }
 0x18d   : > { %629 = vrot.lane.b32.xlu0 %v469_v41, %s965_s14  ;;  %627 = vrot.lane.b32.xlu1 %v471_v43, %s965_s14  ;;  %v439_v56 = vpop.f32.mrb[13].mxu0  ;;  %v489_v57 = vpop.f32.mrb[13].mxu1 }
 0x18e   : > { %v441_v58 = vpop.f32.mrb[14].mxu0  ;;  %v491_v59 = vpop.f32.mrb[14].mxu1 }
 0x18f   : > { %v443_v60 = vpop.f32.mrb[15].mxu0  ;;  %v493_v61 = vpop.f32.mrb[15].mxu1 }
 0x191   : > { %527 = vrot.lane.b32.xlu1 %v423_v44, %s964_s13  ;;  %546 = vrot.lane.b32.xlu0 %v427_v46, %s966_s20 }
 0x194   : > { %v1100_v62 = vpop.f32.mrb[16].mxu0 }
 0x195   : > { %631 = vrot.lane.b32.xlu1 %v473_v45, %s965_s14  ;;  %650 = vrot.lane.b32.xlu0 %v477_v47, %s967_s22  ;;  %v1102_v63 = vpop.f32.mrb[17].mxu0  ;;  %s902_s14 = scalar_lea.vmem %s901_s12, 1024 }
 0x196   : > { %v1104_v0 = vpop.f32.mrb[18].mxu0  ;;  %p904_p1 = scmp.lt.s32.totalorder %s902_s14, %s896_s10 }
 0x197   : > { %v1106_v1 = vpop.f32.mrb[19].mxu0 }
 0x198   : > { %p905_p2 = por %p904_p1, %p903_p0 }
 0x199   : > { %550 = vrot.lane.b32.xlu0 %v429_v48, %s966_s20  ;;  %548 = vrot.lane.b32.xlu1 %v431_v50, %s966_s20 }
 0x19a   : > { %p906_p3 = pnand %p905_p2, %p899_p13 }
 0x19d   : > { %652 = vrot.lane.b32.xlu1 %v481_v51, %s967_s22  ;;  %571 = vrot.lane.b32.xlu0 %v437_v54, %s968_s23 }
 0x1a1   : > { %552 = vrot.lane.b32.xlu1 %v433_v52, %s966_s20  ;;  %575 = vrot.lane.b32.xlu0 %v439_v56, %s968_s23 }
 0x1a5   : > { %654 = vrot.lane.b32.xlu0 %v479_v49, %s967_s22  ;;  %573 = vrot.lane.b32.xlu1 %v441_v58, %s968_s23 }
 0x1a9   : > { %675 = vrot.lane.b32.xlu0 %v487_v55, %s969_s27  ;;  %577 = vrot.lane.b32.xlu1 %v443_v60, %s968_s23 }
 0x1ad   : > { %679 = vrot.lane.b32.xlu0 %v489_v57, %s969_s27  ;;  %656 = vrot.lane.b32.xlu1 %v483_v53, %s967_s22 }
 0x1b1   : > { %677 = vrot.lane.b32.xlu1 %v491_v59, %s969_s27 }
 0x1b5   : > { %681 = vrot.lane.b32.xlu1 %v493_v61, %s969_s27 }
 0x1e7   : > { %v601_v2 = vpop.permute.xlu0 %600  ;;  %v497_v4 = vpop.permute.xlu1 %496 }
 0x1eb   : > { %v501_v5 = vpop.permute.xlu0 %500  ;;  %v499_v6 = vpop.permute.xlu1 %498 }
 0x1ec   : > { %v505_v32 = vsel %vm504_vm5, %v497_v4, %v501_v5  ;;  %v507_v33 = vsel %vm504_vm5, %v501_v5, %v497_v4 }
 0x1ed   : > { %v513_v43 = vsel %vm1148_vm8, %v507_v33, 0.0  ;;  %v514_v44 = vsel %vm1140_vm7, %v505_v32, 0.0 }
 0x1ef   : > { %v605_v7 = vpop.permute.xlu0 %604  ;;  %v1108_v8 = vpop.permute.xlu1 %602 }
 0x1f0   : > { %v609_v42 = vsel %vm608_vm10, %v601_v2, %v605_v7  ;;  %v611_v47 = vsel %vm608_vm10, %v605_v7, %v601_v2 }
 0x1f1   : > { %v617_v50 = vsel %vm1152_vm9, %v609_v42, 0.0 }
 0x1f3   : > { %v503_v9 = vpop.permute.xlu1 %502  ;;  %v522_v10 = vpop.permute.xlu0 %521 }
 0x1f4   : > { %v506_v51 = vsel %vm504_vm5, %v499_v6, %v503_v9  ;;  %v508_v52 = vsel %vm504_vm5, %v503_v9, %v499_v6  ;;  %vm707_vm5 = vcmask 1043456  }
 0x1f7   : > { %v1110_v12 = vpop.permute.xlu1 %606  ;;  %v1112_v13 = vpop.permute.xlu0 %625 }
 0x1f8   : > { %v610_v30 = vsel %vm608_vm10, %v1108_v8, %v1110_v12  ;;  %v612_v34 = vsel %vm608_vm10, %v1110_v12, %v1108_v8 }
 0x1f9   : > { %v619_v29 = vsel %vm1152_vm9, %v610_v30, 0.0 }
 0x1fb   : > { %v526_v14 = vpop.permute.xlu0 %525  ;;  %v524_v15 = vpop.permute.xlu1 %523 }
 0x1fc   : > { %v532_v28 = vsel %vm529_vm2, %v526_v14, %v522_v10  ;;  %v530_v38 = vsel %vm529_vm2, %v522_v10, %v526_v14  ;;  %v515_v10 = vsel %vm1148_vm8, %v508_v52, 0.0  ;;  %v516_v14 = vsel %vm1140_vm7, %v506_v51, 0.0 }
 0x1fd   : > { %v538_v39 = vsel %vm244_vm3, %v532_v28, 0.0  ;;  %v543_v49 = vadd.f32 %v530_v38, %v514_v44 }
 0x1fe   : > { %v542_v48 = vadd.f32 %v538_v39, %v513_v43 }
 0x1ff   : > { %v1114_v16 = vpop.permute.xlu0 %629  ;;  %v1116_v17 = vpop.permute.xlu1 %627 }
 0x203   : > { %v528_v19 = vpop.permute.xlu1 %527  ;;  %v547_v20 = vpop.permute.xlu0 %546 }
 0x204   : > { %v533_v53 = vsel %vm529_vm2, %v528_v19, %v524_v15  ;;  %v531_v5 = vsel %vm529_vm2, %v524_v15, %v528_v19  ;;  %v636_v15 = vsel %vm633_vm14, %v1114_v16, %v1112_v13  ;;  %vm1240_vm2 = vmand %vm255_vm13, %vm1140_vm7 }
 0x205   : > { %v540_v6 = vsel %vm244_vm3, %v533_v53, 0.0  ;;  %v545_v33 = vadd.f32 %v531_v5, %v516_v14  ;;  %v643_v38 = vsel %vm1240_vm2, %v636_v15, 0.0  ;;  %vm1284_vm3 = vmand %vm255_vm13, %vm1173_vm12 }
 0x206   : > { %v544_v32 = vadd.f32 %v540_v6, %v515_v10 }
 0x207   : > { %v1125_v23 = vpop.permute.xlu1 %631  ;;  %v1127_v24 = vpop.permute.xlu0 %650 }
 0x20b   : > { %v551_v26 = vpop.permute.xlu0 %550  ;;  %v549_v27 = vpop.permute.xlu1 %548 }
 0x20c   : > { %v555_v35 = vsel %vm554_vm6, %v547_v20, %v551_v26  ;;  %v557_v36 = vsel %vm554_vm6, %v551_v26, %v547_v20  ;;  %v634_v20 = vsel %vm633_vm14, %v1112_v13, %v1114_v16  ;;  %v618_v16 = vsel %vm1173_vm12, %v611_v47, 0.0 }
 0x20d   : > { %v563_v45 = vsel %vm1165_vm11, %v557_v36, 0.0  ;;  %v564_v46 = vsel %vm1173_vm12, %v555_v35, 0.0  ;;  %v642_v36 = vsel %vm1132_vm4, %v634_v20, 0.0 }
 0x20e   : > { %v567_v56 = vadd.f32 %v563_v45, %v542_v48  ;;  %v568_v57 = vadd.f32 %v564_v46, %v543_v49 }
 0x20f   : > { %v1181_v40 = vpop.permute.xlu1 %652  ;;  %v572_v41 = vpop.permute.xlu0 %571 }
 0x213   : > { %v553_v54 = vpop.permute.xlu1 %552  ;;  %v576_v55 = vpop.permute.xlu0 %575 }
 0x214   : > { %v580_v58 = vsel %vm579_vm15, %v572_v41, %v576_v55  ;;  %v582_v59 = vsel %vm579_vm15, %v576_v55, %v572_v41  ;;  %v556_v60 = vsel %vm554_vm6, %v549_v27, %v553_v54  ;;  %v558_v61 = vsel %vm554_vm6, %v553_v54, %v549_v27 }
 0x215   : > { %v588_v2 = vsel %vm1132_vm4, %v582_v59, 0.0  ;;  %v589_v4 = vsel %vm1140_vm7, %v580_v58, 0.0  ;;  %v565_v26 = vsel %vm1165_vm11, %v558_v61, 0.0  ;;  %v566_v27 = vsel %vm1173_vm12, %v556_v60, 0.0 }
 0x216   : > { %v592_v7 = vadd.f32 %v588_v2, %v567_v56  ;;  %v593_v9 = vadd.f32 %v589_v4, %v568_v57  ;;  %v569_v39 = vadd.f32 %v565_v26, %v544_v32  ;;  %v570_v41 = vadd.f32 %v566_v27, %v545_v33 }
 0x217   : > { %v655_v19 = vpop.permute.xlu0 %654  ;;  %v574_v22 = vpop.permute.xlu1 %573  ;;  %v701_v54 = vcombine.high %v1057_v11, %v1057_v11  ;;  %v635_v55 = vsel %vm633_vm14, %v1116_v17, %v1125_v23  ;;  %v637_v56 = vsel %vm633_vm14, %v1125_v23, %v1116_v17  ;;  %v620_v4 = vsel %vm1173_vm12, %v612_v34, 0.0 }
 0x218   : > { %v596_v28 = vadd.f32 %v592_v7, %v1100_v62  ;;  %v597_v13 = vadd.f32 %v593_v9, %v1102_v63  ;;  %v661_v62 = vsel %vm658_vm0, %v655_v19, %v1127_v24  ;;  %v659_v46 = vsel %vm658_vm0, %v1127_v24, %v655_v19 }
 0x219   : > { %v668_v47 = vsel %vm255_vm13, %v661_v62, 0.0  ;;  %v644_v37 = vsel %vm1132_vm4, %v635_v55, 0.0  ;;  %v645_v9 = vsel %vm1240_vm2, %v637_v56, 0.0 }
 0x21a   : > { %v621_v35 = vadd.f32 %v617_v50, %v596_v28  ;;  %v622_v63 = vadd.f32 %v618_v16, %v597_v13 }
 0x21b   : > { %v676_v42 = vpop.permute.xlu0 %675  ;;  %v578_v43 = vpop.permute.xlu1 %577 }
 0x21c   : > { %v646_v44 = vadd.f32 %v642_v36, %v621_v35  ;;  %v647_v45 = vadd.f32 %v643_v38, %v622_v63  ;;  %v581_v8 = vsel %vm579_vm15, %v574_v22, %v578_v43  ;;  %v583_v12 = vsel %vm579_vm15, %v578_v43, %v574_v22 }
 0x21d   : > { %v590_v48 = vsel %vm1132_vm4, %v583_v12, 0.0  ;;  %v591_v49 = vsel %vm1140_vm7, %v581_v8, 0.0 }
 0x21e   : > { %v671_v50 = vadd.f32 %v659_v46, %v646_v44  ;;  %v594_v51 = vadd.f32 %v590_v48, %v569_v39  ;;  %v595_v52 = vadd.f32 %v591_v49, %v570_v41  ;;  %v672_v24 = vadd.f32 %v668_v47, %v647_v45 }
 0x21f   : > { %v680_v57 = vpop.permute.xlu0 %679  ;;  %v657_v58 = vpop.permute.xlu1 %656 }
 0x220   : > { %v598_v59 = vadd.f32 %v594_v51, %v1104_v0  ;;  %v599_v60 = vadd.f32 %v595_v52, %v1106_v1  ;;  %v684_v61 = vsel %vm683_vm1, %v676_v42, %v680_v57  ;;  %v686_v2 = vsel %vm683_vm1, %v680_v57, %v676_v42 }
 0x221   : > { %v692_v17 = vsel %vm1152_vm9, %v684_v61, 0.0  ;;  %v693_v23 = vsel %vm1284_vm3, %v686_v2, 0.0  ;;  %v662_v0 = vsel %vm658_vm0, %v657_v58, %v1181_v40  ;;  %v660_v22 = vsel %vm658_vm0, %v1181_v40, %v657_v58 }
 0x222   : > { %v623_v1 = vadd.f32 %v619_v29, %v598_v59  ;;  %v624_v5 = vadd.f32 %v620_v4, %v599_v60  ;;  %v696_v6 = vadd.f32 %v692_v17, %v671_v50  ;;  %v697_v7 = vadd.f32 %v693_v23, %v672_v24 }
 0x223   : > { %v678_v10 = vpop.permute.xlu1 %677  ;;  %v670_v26 = vsel %vm255_vm13, %v662_v0, 0.0 }
 0x224   : > { %v648_v14 = vadd.f32 %v644_v37, %v623_v1  ;;  %v649_v20 = vadd.f32 %v645_v9, %v624_v5  ;;  %v708_v15 = vrot.slane %v696_v6, 4  ;;  %v709_v19 = vrot.slane %v697_v7, 4 }
 0x226   : > { %v718_v3 = vsel %vm707_vm5, %v1057_v11, %v708_v15  ;;  %v719_v25 = vsel %vm707_vm5, %v701_v54, %v709_v19  ;;  %v673_v27 = vadd.f32 %v660_v22, %v648_v14  ;;  %v674_v28 = vadd.f32 %v670_v26, %v649_v20 }
 0x227   : > { %720 = vst [vmem:[%s190_s30] sm:$0xff] %v718_v3  ;;  %721 = vst [vmem:[%s190_s30 + $0x8] sm:$0xff] %v719_v25  ;;  %v682_v13 = vpop.permute.xlu1 %681 }
 0x228   : > { %v685_v16 = vsel %vm683_vm1, %v678_v10, %v682_v13  ;;  %v687_v40 = vsel %vm683_vm1, %v682_v13, %v678_v10 }
 0x229   : > { %v694_v21 = vsel %vm1152_vm9, %v685_v16, 0.0  ;;  %v695_v11 = vsel %vm1284_vm3, %v687_v40, 0.0 }
 0x22a   : > { %v698_v30 = vadd.f32 %v694_v21, %v673_v27  ;;  %v699_v32 = vadd.f32 %v695_v11, %v674_v28 }
 0x22c   : > { %v710_v33 = vrot.slane %v698_v30, 4  ;;  %v712_v34 = vrot.slane %v699_v32, 4 }
 0x22e   : > { %v711_v18 = vsel %vm707_vm5, %v708_v15, %v710_v33  ;;  %v713_v31 = vsel %vm707_vm5, %v709_v19, %v712_v34 }
 0x22f   : > { %722 = vst [vmem:[%s190_s30 + $0x10] sm:$0xff] %v711_v18  ;;  %723 = vst [vmem:[%s190_s30 + $0x18] sm:$0xff] %v713_v31 }
 0x230   : > { %909 = shalt.err (!%p906_p3)
}
 0x231   : > { %s910_s20 = scalar_lea.hbm %s1342_s9, 512  ;;  %s914_s27 = scalar_lea.hbm %s1396_s4, 1024 }
 0x232   : > { %p911_p4 = scmp.ne.s32.totalorder %s1342_s9, %s910_s20  ;;  %p915_p9 = scmp.lt.u32.totalorder %s1342_s9, %s1396_s4 }
 0x233   : > { %p916_p10 = scmp.lt.u32.totalorder %s914_s27, %s910_s20  ;;  %p918_p12 = scmp.lt.u32.totalorder %s910_s20, %s1342_s9 }
 0x234   : > { %p912_p7 = pnand %p911_p4, %p1035_p5 }
 0x235   : > { %p917_p11 = por %p916_p10, %p915_p9 }
 0x236   : > { %p913_p8 = pneg %p912_p7 }
 0x237   : > { %p919_p13 = por %p918_p12, %p917_p11 }
 0x239   : > { %p920_p0 = pnand %p919_p13, %p913_p8 }
 0x23b   : > { %923 = shalt.err (!%p920_p0)
}
 0x23c   : > { %s971_s30 = smov 256  }
 0x23d   : > { %835 = dma.vmem_to_hbm [thread:$0]  (%p1035_p5), %s1344_s6, 512, %s1342_s9, %s1350_s19, %s971_s30, %s971_s30, %s964_s13  }
 0x23e PF: > { %p841_p1 = scmp.ge.s32.totalorder %s958_s18, 2  ;;  %s753_s5 = sand.u32 1, %s946_s15  }
 0x23f   : > { %s754_s7 = scalar_lea.sflag [#allocation3], %s753_s5 }
 0x240   : > { %p838_p2 = pnand %p841_p1, %p1039_p6 }
 0x242   : > { %941 = dma.done.wait (!%p838_p2), %s754_s7, 512  }
 0x243   : > { %943 = vsyncadd (!%p838_p2), %s754_s7, 4294966784  ;;  %p14_p3 = scmp.ge.s32.totalorder %s1022_s21, 4   ;;  %s1415_s15 = smov %s950_s16 }
 0x244   : > { %s1416_s16 = smov %s954_s17  ;;  %s1417_s17 = smov %s1033_s24 }
 0x245   : > { %s1418_s18 = smov %s1022_s21  ;;  %16 = sbr.rel (!%p14_p3) target bundleno = 3 (0x3), region = 71 }
 0x24c   :  { %759 = vsyncpa [#allocation3], 1 }
 0x24d   :  { %761 = vsyncpa [#allocation3 + $0x1], 1 }

</bundles_post_ra>
